<compile_context>
chip_gen: v5e
topology: v5e:2x2
jax: 0.10.0
libtpu: 0.0.40
codegen_flags: <defaults>
</compile_context>

<pallas_src>
import functools

import jax
import jax.numpy as jnp
from jax.experimental import pallas as pl
from jax.experimental.pallas import tpu as pltpu

IGNORE_LABEL = -1
THRESH = 0.7
MIN_KEPT = 100000  # nn default; weight=None -> no class weights


# --------------------------------------------------------------------------
# Kernel 1: per-pixel cross-entropy loss + softmax prob of the target class.
# score block: (C, TILE_PX)  (classes on sublanes, pixels on lanes)
# target block: (1, TILE_PX) int32
# outputs: loss (1, TILE_PX), prob (1, TILE_PX); invalid pixels -> loss 0,
#          prob sentinel 2.0 (so downstream `prob < threshold` excludes them).
# --------------------------------------------------------------------------
def _ce_prob_kernel(score_ref, tgt_ref, loss_ref, prob_ref, *, ignore_label):
    s = score_ref[...].astype(jnp.float32)            # (C, T)
    t = tgt_ref[...]                                  # (1, T) int32
    valid = t != ignore_label                         # (1, T)
    t0 = jnp.where(valid, t, 0)                       # ignore -> class 0 (tmp_target)

    m = jnp.max(s, axis=0, keepdims=True)             # (1, T)
    lse = m + jnp.log(jnp.sum(jnp.exp(s - m), axis=0, keepdims=True))

    row = jax.lax.broadcasted_iota(jnp.int32, s.shape, dimension=0)   # (C, T)
    # select-then-reduce (vsel) instead of one-hot cast + multiply
    s_t = jnp.sum(jnp.where(row == t0, s, 0.0), axis=0, keepdims=True)  # (1, T)

    loss = lse - s_t                                   # -log softmax[target]
    prob = jnp.exp(s_t - lse)                          # softmax[target] (pred.gather)

    loss_ref[...] = jnp.where(valid, loss, 0.0)        # ignore_index -> 0 loss
    prob_ref[...] = jnp.where(valid, prob, 2.0)        # sentinel > any threshold


# --------------------------------------------------------------------------
# Kernel 2: masked OHEM reduction: sum(loss[prob < thr]) and count.
# Invalid / padded pixels carry prob == 2.0 >= thr, so no target is needed.
# --------------------------------------------------------------------------
def _ohem_reduce_kernel(thr_ref, loss_ref, prob_ref, sum_ref, cnt_ref):
    @pl.when(pl.program_id(0) == 0)
    def _():
        sum_ref[...] = jnp.zeros_like(sum_ref)
        cnt_ref[...] = jnp.zeros_like(cnt_ref)

    thr = thr_ref[0]
    keep = (prob_ref[...] < thr).astype(jnp.float32)   # (1, T)
    sum_ref[0, 0] += jnp.sum(loss_ref[...] * keep)
    cnt_ref[0, 0] += jnp.sum(keep)


def _round_up(x, m):
    return ((x + m - 1) // m) * m


def _pick_tile_px(p, c, requested):
    """Lane-dense tile size: multiple of 512, VMEM-budgeted by C, divides P if possible."""
    # rough live-tile bytes/pixel: 2 input buffers + ~5 (C,T) f32 temporaries + outputs
    budget_bytes = 20 * 1024 * 1024          # conservative, fits v7x's 32 MiB scoped VMEM
    per_px = 4 * (7 * max(c, 1) + 8)
    cap = max(512, (budget_bytes // per_px) // 512 * 512)
    t = min(requested, cap, _round_up(p, 512))
    t = max(512, (t // 512) * 512)
    # prefer a tile that divides p exactly -> skip the jnp.pad HBM copy
    for cand in range(t, 511, -512):
        if p % cand == 0:
            return cand
    return t


def ohem_cross_entropy(score, target, *, ignore_label=IGNORE_LABEL,
                       thresh=THRESH, min_kept=MIN_KEPT, tile_px=8192):
    """score: (N, C, H, W) float; target: (N, H, W) int labels (or ignore_label)."""
    min_kept = max(1, min_kept)
    n, c, ph, pw = score.shape
    _, h, w = target.shape
    if (ph, pw) != (h, w):
        # glue: F.upsample(mode='bilinear') equivalent
        score = jax.image.resize(score, (n, c, h, w), method="bilinear")

    p = n * h * w
    # class-major: (N,C,H,W) -> (C, N*H*W); leading-dim swap only (H,W untouched)
    score2d = jnp.transpose(score, (1, 0, 2, 3)).reshape(c, p)
    tgt2d = target.reshape(1, p).astype(jnp.int32)

    tile = _pick_tile_px(p, c, tile_px)
    p_pad = _round_up(p, tile)
    if p_pad != p:
        score2d = jnp.pad(score2d, ((0, 0), (0, p_pad - p)))
        tgt2d = jnp.pad(tgt2d, ((0, 0), (0, p_pad - p)), constant_values=ignore_label)

    grid = (p_pad // tile,)

    loss, prob = pl.pallas_call(
        functools.partial(_ce_prob_kernel, ignore_label=ignore_label),
        out_shape=(jax.ShapeDtypeStruct((1, p_pad), jnp.float32),
                   jax.ShapeDtypeStruct((1, p_pad), jnp.float32)),
        grid=grid,
        in_specs=[pl.BlockSpec((c, tile), lambda i: (0, i)),
                  pl.BlockSpec((1, tile), lambda i: (0, i))],
        out_specs=(pl.BlockSpec((1, tile), lambda i: (0, i)),
                   pl.BlockSpec((1, tile), lambda i: (0, i))),
        compiler_params=pltpu.CompilerParams(
            dimension_semantics=("parallel",)),   # independent tiles -> megacore on v7x
    )(score2d, tgt2d)

    # ---- glue: OHEM threshold = max(thresh, k-th smallest gt-prob among valid)
    prob_flat = prob[0, :p]                               # padded tail dropped
    mask = target.reshape(-1) != ignore_label
    n_valid = jnp.sum(mask.astype(jnp.int32))
    k = jnp.minimum(jnp.int32(min_kept), n_valid - 1)     # min(min_kept, numel-1)

    # If >= k+1 valid pixels already have prob <= thresh, the k-th smallest prob
    # is <= thresh and the threshold is just `thresh`: skip the O(P log P) sort.
    count_le = jnp.sum((prob_flat <= jnp.float32(thresh)).astype(jnp.int32))

    def _kth_smallest():
        sp = jnp.sort(prob_flat)                          # invalid (2.0) sort to the end
        return sp[jnp.maximum(k, 0)]

    min_value = jax.lax.cond(count_le >= k + 1,
                             lambda: jnp.float32(0.0),    # threshold will be `thresh`
                             _kth_smallest)
    threshold = jnp.maximum(min_value, jnp.float32(thresh)).reshape(1)

    sum_loss, cnt = pl.pallas_call(
        _ohem_reduce_kernel,
        out_shape=(jax.ShapeDtypeStruct((1, 1), jnp.float32),
                   jax.ShapeDtypeStruct((1, 1), jnp.float32)),
        grid=grid,
        in_specs=[pl.BlockSpec(memory_space=pltpu.MemorySpace.SMEM),
                  pl.BlockSpec((1, tile), lambda i: (0, i)),
                  pl.BlockSpec((1, tile), lambda i: (0, i))],
        out_specs=(pl.BlockSpec((1, 1), lambda i: (0, 0)),
                   pl.BlockSpec((1, 1), lambda i: (0, 0))),
        compiler_params=pltpu.CompilerParams(
            dimension_semantics=("arbitrary",)),          # carries an accumulator
    )(threshold, loss, prob)

    return sum_loss[0, 0] / cnt[0, 0]   # mean over kept pixels (nan if empty, as torch)


def ohem_reference(score, target, ignore_label=IGNORE_LABEL, thresh=THRESH,
                   min_kept=MIN_KEPT):
    """Pure-JAX reference mirroring the PyTorch module."""
    n, c, h, w = score.shape
    logits = jnp.transpose(score, (0, 2, 3, 1)).reshape(-1, c)
    tgt = target.reshape(-1)
    mask = tgt != ignore_label
    t0 = jnp.where(mask, tgt, 0)
    logp = jax.nn.log_softmax(logits, axis=-1)
    loss = -jnp.take_along_axis(logp, t0[:, None], axis=-1)[:, 0]
    prob = jnp.exp(-loss)
    n_valid = jnp.sum(mask.astype(jnp.int32))
    sortp = jnp.sort(jnp.where(mask, prob, 2.0))
    kk = jnp.minimum(jnp.int32(max(1, min_kept)), n_valid - 1)
    thr = jnp.maximum(sortp[kk], jnp.float32(thresh))
    keep = mask & (prob < thr)
    return jnp.sum(jnp.where(keep, loss, 0.0)) / jnp.sum(keep.astype(jnp.float32))


if __name__ == "__main__":
    key = jax.random.PRNGKey(0)
    k1, k2 = jax.random.split(key)
    N, C, H, W = 2, 4, 16, 16
    score = jax.random.normal(k1, (N, C, H, W), dtype=jnp.float32)
    # labels in [-1, C): include ignore_label = -1 pixels
    target = jax.random.randint(k2, (N, H, W), -1, C).astype(jnp.int32)

    out = ohem_cross_entropy(score, target)
    out = jax.block_until_ready(out)

    ref = ohem_reference(score, target)
    assert jnp.allclose(out, ref, atol=1e-5, rtol=1e-5), (out, ref)
    print("KERNEL_OK")
</pallas_src>

<mosaic_0001>
module attributes {stable_mosaic.version = 11 : i64} {
  func.func @_ce_prob_kernel(%arg0: i32, %arg1: memref<4x512xf32, #tpu.memory_space<vmem>>, %arg2: memref<1x512xi32, #tpu.memory_space<vmem>>, %arg3: memref<1x512xf32, #tpu.memory_space<vmem>>, %arg4: memref<1x512xf32, #tpu.memory_space<vmem>>) attributes {dimension_semantics = [#tpu.dimension_semantics<parallel>], iteration_bounds = array<i64: 1>, scalar_prefetch = 0 : i64, scratch_operands = 0 : i64, tpu.core_type = #tpu.core_type<tc>, window_params = [{transform_indices = @transform_0, window_bounds = array<i64: 4, 512>}, {transform_indices = @transform_1, window_bounds = array<i64: 1, 512>}, {transform_indices = @transform_2, window_bounds = array<i64: 1, 512>}, {transform_indices = @transform_3, window_bounds = array<i64: 1, 512>}]} {
    %c0 = arith.constant 0 : index
    %c0_0 = arith.constant 0 : index
    %0 = vector.load %arg1[%c0, %c0_0] : memref<4x512xf32, #tpu.memory_space<vmem>>, vector<4x512xf32>
    %c0_1 = arith.constant 0 : index
    %c0_2 = arith.constant 0 : index
    %1 = vector.load %arg2[%c0_1, %c0_2] : memref<1x512xi32, #tpu.memory_space<vmem>>, vector<1x512xi32>
    %c-1_i32 = arith.constant -1 : i32
    %2 = vector.broadcast %c-1_i32 : i32 to vector<1x512xi32>
    %3 = arith.cmpi ne, %1, %2 : vector<1x512xi32>
    %c0_i32 = arith.constant 0 : i32
    %4 = vector.broadcast %c0_i32 : i32 to vector<1x512xi32>
    %5 = arith.select %3, %1, %4 : vector<1x512xi1>, vector<1x512xi32>
    %cst = arith.constant dense<0xFF800000> : vector<512xf32>
    %6 = vector.multi_reduction <maximumf>, %0, %cst [0] : vector<4x512xf32> to vector<512xf32>
    %7 = vector.shape_cast %6 : vector<512xf32> to vector<1x512xf32>
    %8 = vector.broadcast %7 : vector<1x512xf32> to vector<4x512xf32>
    %9 = arith.subf %0, %8 : vector<4x512xf32>
    %10 = math.exp %9 : vector<4x512xf32>
    %cst_3 = arith.constant dense<0.000000e+00> : vector<512xf32>
    %11 = vector.multi_reduction <add>, %10, %cst_3 [0] : vector<4x512xf32> to vector<512xf32>
    %12 = vector.shape_cast %11 : vector<512xf32> to vector<1x512xf32>
    %13 = math.log %12 : vector<1x512xf32>
    %14 = arith.addf %7, %13 : vector<1x512xf32>
    %15 = tpu.iota {dimensions = array<i32: 0>} : vector<4x512xi32>
    %16 = vector.broadcast %5 : vector<1x512xi32> to vector<4x512xi32>
    %17 = arith.cmpi eq, %15, %16 : vector<4x512xi32>
    %cst_4 = arith.constant 0.000000e+00 : f32
    %18 = vector.broadcast %cst_4 : f32 to vector<4x512xf32>
    %19 = arith.select %17, %0, %18 : vector<4x512xi1>, vector<4x512xf32>
    %cst_5 = arith.constant dense<0.000000e+00> : vector<512xf32>
    %20 = vector.multi_reduction <add>, %19, %cst_5 [0] : vector<4x512xf32> to vector<512xf32>
    %21 = vector.shape_cast %20 : vector<512xf32> to vector<1x512xf32>
    %22 = arith.subf %14, %21 : vector<1x512xf32>
    %23 = arith.subf %21, %14 : vector<1x512xf32>
    %24 = math.exp %23 : vector<1x512xf32>
    %cst_6 = arith.constant 0.000000e+00 : f32
    %25 = vector.broadcast %cst_6 : f32 to vector<1x512xf32>
    %26 = arith.select %3, %22, %25 : vector<1x512xi1>, vector<1x512xf32>
    %c0_7 = arith.constant 0 : index
    %c0_8 = arith.constant 0 : index
    %27 = vector.load %arg3[%c0_7, %c0_8] : memref<1x512xf32, #tpu.memory_space<vmem>>, vector<1x512xf32>
    tpu.vector_store %arg3[%c0_7, %c0_8], %26 {strides = array<i32>} : memref<1x512xf32, #tpu.memory_space<vmem>>, vector<1x512xf32>,
    %cst_9 = arith.constant 2.000000e+00 : f32
    %28 = vector.broadcast %cst_9 : f32 to vector<1x512xf32>
    %29 = arith.select %3, %24, %28 : vector<1x512xi1>, vector<1x512xf32>
    %c0_10 = arith.constant 0 : index
    %c0_11 = arith.constant 0 : index
    %30 = vector.load %arg4[%c0_10, %c0_11] : memref<1x512xf32, #tpu.memory_space<vmem>>, vector<1x512xf32>
    tpu.vector_store %arg4[%c0_10, %c0_11], %29 {strides = array<i32>} : memref<1x512xf32, #tpu.memory_space<vmem>>, vector<1x512xf32>,
    return
  }
  func.func @transform_0(%arg0: i32) -> (i32, i32) {
    %c0_i32 = arith.constant 0 : i32
    %c0_i32_0 = arith.constant 0 : i32
    return %c0_i32, %arg0 : i32, i32
  }
  func.func @transform_1(%arg0: i32) -> (i32, i32) {
    %c0_i32 = arith.constant 0 : i32
    %c0_i32_0 = arith.constant 0 : i32
    return %c0_i32, %arg0 : i32, i32
  }
  func.func @transform_2(%arg0: i32) -> (i32, i32) {
    %c0_i32 = arith.constant 0 : i32
    %c0_i32_0 = arith.constant 0 : i32
    return %c0_i32, %arg0 : i32, i32
  }
  func.func @transform_3(%arg0: i32) -> (i32, i32) {
    %c0_i32 = arith.constant 0 : i32
    %c0_i32_0 = arith.constant 0 : i32
    return %c0_i32, %arg0 : i32, i32
  }
}

</mosaic_0001>

<bundles_post_ra>
// kernel: tpu_custom_call.1
= control target key start
LH: loop header
LB: loop body
LE: loop exit
PB: predicated region body
PF: predicated region fallthrough
CT: control target
= control target key end

     0   :  { %9 = vsyncpa [#allocation3], 0  ;;  %s544_s0 = inlined_call_operand.hbm [shape: f32[4,512], index: 0, kind: input, shape index: {}]   ;;  %s545_s1 = inlined_call_operand.hbm [shape: s32[1,512], index: 1, kind: input, shape index: {}]   ;;  %s546_s2 = inlined_call_operand.hbm [shape: f32[1,512], index: 2, kind: output, shape index: {0}]   ;;  %s547_s3 = inlined_call_operand.hbm [shape: f32[1,512], index: 3, kind: output, shape index: {1}]  }
   0x1   :  { %10 = vsyncpa [#allocation6], 0 }
   0x2   :  { %11 = vsyncpa [#allocation4], 0 }
   0x3   :  { %12 = vsyncpa [#allocation9], 0  ;;  %s18_s14 = sshll.u32 %s544_s0, 4  ;;  %s423_s15 = smov [#allocation2]   ;;  %s19_s14 = int_to_ptr.hbm [resolvable:$true] %s18_s14 }
   0x4   :  { %s20_s16 = sshll.u32 %s423_s15, 4  ;;  %s29_s19 = sshll.u32 %s545_s1, 4  ;;  %s21_s16 = int_to_ptr.vmem [resolvable:$true] %s20_s16  ;;  %s30_s19 = int_to_ptr.hbm [resolvable:$true] %s29_s19 }
   0x5   :  { %23 = dma.hbm_to_vmem [thread:$0]  %s19_s14, 256, %s21_s16, [#allocation3]  }
   0x6   :  { %s424_s20 = smov [#allocation5]  }
   0x7   :  { %s31_s21 = sshll.u32 %s424_s20, 4  ;;  %s32_s21 = int_to_ptr.vmem [resolvable:$true] %s31_s21 }
   0x8   :  { %34 = dma.hbm_to_vmem [thread:$0]  %s30_s19, 64, %s32_s21, [#allocation6]  }
   0x9   :  { %415 = dma.done.wait [#allocation3], 256  }
   0xa   :  { %416 = vsyncadd [#allocation3], 4294967040 }
   0xb   :  { %417 = dma.done.wait [#allocation6], 64  }
   0xc   :  { %418 = vsyncadd [#allocation6], 4294967232  ;;  %v43_v0 = vld [vmem:[#allocation2] sm:$0xff]  ;;  %v453_v1 = vld [vmem:[#allocation2 + $0x8] sm:$0xff]  ;;  %vm61_vm0 = vcmask 1043456   ;;  %v159_v46 = vlaneseq  ;;  %vm235_vm6 = vcmask 1040384  }
   0xd   :  { %50 = vst [vmem:[#allocation1] ss:$2 sm:$0xff] %v43_v0  ;;  %v475_v43 = vld [vmem:[#allocation5] sm:$0xf]  ;;  %vm237_vm7 = vcmask 1042434   ;;  %vm239_vm8 = vcmask 1041408  }
   0xe   :  { %52 = vst [vmem:[#allocation1 + $0x10] ss:$2 sm:$0xff] %v453_v1  ;;  %vm46_vm1 = vcmp.ne.s32.totalorder %v475_v43, 4294967295  ;;  %v160_v55 = vshrl.u32 %v159_v46, 7  ;;  %s425_s0 = smov [#allocation7]   ;;  %s268_s24 = sshll.u32 %s546_s2, 4  ;;  %s269_s24 = int_to_ptr.hbm [resolvable:$true] %s268_s24 }
   0xf   :  { %v47_v45 = vsel %vm46_vm1, %v475_v43, 0  ;;  %s266_s1 = sshll.u32 %s425_s0, 4  ;;  %vm525_vm9 = vcmp.lt.s32.totalorder %v159_v46, 512  ;;  %s426_s2 = smov [#allocation8]   ;;  %s267_s1 = int_to_ptr.vmem [resolvable:$true] %s266_s1 }
  0x10   :  { %v161_v51 = vperm.slane %v47_v45, 0  ;;  %v162_v58 = vperm.slane %v47_v45, 1  ;;  %s277_s25 = sshll.u32 %s426_s2, 4  ;;  %s279_s28 = sshll.u32 %s547_s3, 4  ;;  %s278_s25 = int_to_ptr.vmem [resolvable:$true] %s277_s25  ;;  %s280_s28 = int_to_ptr.hbm [resolvable:$true] %s279_s28 }
  0x12   :  { %vm487_vm2 = vcmp.eq.s32.totalorder %v160_v55, %v161_v51  ;;  %vm491_vm3 = vcmp.eq.s32.totalorder %v160_v55, %v162_v58 }
  0x14   :  { %v53_v2 = vld.sshfl [vmem:[#allocation1] sm:$0xff pattern:$0x75316420]  ;;  %v54_v3 = vld.sshfl [vmem:[#allocation1 + $0x8] sm:$0xff pattern:$0x75316420] }
  0x15   :  { %v62_v4 = vsel %vm61_vm0, %v53_v2, -inf  ;;  %v69_v5 = vsel %vm61_vm0, %v54_v3, -inf  ;;  %v55_v6 = vld.sshfl [vmem:[#allocation1 + $0x10] sm:$0xff pattern:$0x75316420]  ;;  %v163_v2 = vperm.slane %v47_v45, 2 }
  0x16   :  { %v63_v7 = vrot.slane %v62_v4, 4  ;;  %v70_v8 = vrot.slane %v69_v5, 4  ;;  %v56_v9 = vld.sshfl [vmem:[#allocation1 + $0x18] sm:$0xff pattern:$0x75316420]  ;;  %v76_v10 = vsel %vm61_vm0, %v55_v6, -inf }
  0x17   :  { %v77_v11 = vrot.slane %v76_v10, 4  ;;  %v83_v12 = vsel %vm61_vm0, %v56_v9, -inf  ;;  %vm495_vm4 = vcmp.eq.s32.totalorder %v160_v55, %v163_v2 }
  0x18   :  { %v64_v13 = vmax.f32 %v62_v4, %v63_v7  ;;  %v71_v14 = vmax.f32 %v69_v5, %v70_v8  ;;  %v84_v15 = vrot.slane %v83_v12, 4 }
  0x19   :  { %v78_v16 = vmax.f32 %v76_v10, %v77_v11 }
  0x1a   :  { %v65_v17 = vrot.slane %v64_v13, 2  ;;  %v72_v18 = vrot.slane %v71_v14, 2  ;;  %v85_v19 = vmax.f32 %v83_v12, %v84_v15 }
  0x1b   :  { %v79_v20 = vrot.slane %v78_v16, 2 }
  0x1c   :  { %v66_v21 = vmax.f32 %v64_v13, %v65_v17  ;;  %v73_v22 = vmax.f32 %v71_v14, %v72_v18  ;;  %v86_v23 = vrot.slane %v85_v19, 2 }
  0x1d   :  { %v80_v24 = vmax.f32 %v78_v16, %v79_v20 }
  0x1e   :  { %v67_v25 = vrot.slane %v66_v21, 1  ;;  %v74_v26 = vrot.slane %v73_v22, 1  ;;  %v87_v27 = vmax.f32 %v85_v19, %v86_v23 }
  0x1f   :  { %v81_v29 = vrot.slane %v80_v24, 1 }
  0x20   :  { %v460_v28 = vmax.f32 %v73_v22, %v74_v26  ;;  %v88_v30 = vrot.slane %v87_v27, 1  ;;  %v462_v31 = vmax.f32 %v66_v21, %v67_v25 }
  0x21   :  { %v469_v35 = vmax.f32 %v80_v24, %v81_v29 }
  0x22   :  { %v94_v32 = vrot.slane %v460_v28, 4  ;;  %v465_v33 = vmax.f32 %v87_v27, %v88_v30 }
  0x24   :  { %v96_v34 = vsel %vm61_vm0, %v462_v31, %v94_v32  ;;  %v95_v36 = vrot.slane %v465_v33, 4 }
  0x25   :  { %v100_v37 = vsub.f32 %v43_v0, %v96_v34 }
  0x26   :  { %v97_v38 = vsel %vm61_vm0, %v469_v35, %v95_v36 }
  0x27   :  { %v102_v39 = vmul.f32 1.442695, %v100_v37  ;;  %v101_v40 = vsub.f32 %v453_v1, %v97_v38 }
  0x29   :  { %299 = vpow2.f32 %v102_v39  ;;  %v104_v41 = vmul.f32 1.442695, %v101_v40 }
  0x2b   :  { %301 = vpow2.f32 %v104_v41 }
  0x2f   :  { %v300_v42 = vpop.eup %299 }
  0x30   :  { %108 = vst [vmem:[#allocation1] ss:$2 sm:$0xff] %v300_v42 }
  0x31   :  { %v302_v44 = vpop.eup %301 }
  0x32   :  { %110 = vst [vmem:[#allocation1 + $0x10] ss:$2 sm:$0xff] %v302_v44 }
  0x37   :  { %v111_v47 = vld.sshfl [vmem:[#allocation1] sm:$0xff pattern:$0x75316420]  ;;  %v112_v48 = vld.sshfl [vmem:[#allocation1 + $0x8] sm:$0xff pattern:$0x75316420] }
  0x38   :  { %v119_v49 = vsel %vm61_vm0, %v111_v47, 0.0  ;;  %v126_v50 = vsel %vm61_vm0, %v112_v48, 0.0  ;;  %169 = vst [vmem:[#allocation1] ss:$2 sm:$0xff] %v43_v0  ;;  %v164_v0 = vperm.slane %v47_v45, 3 }
  0x39   :  { %v120_v52 = vrot.slane %v119_v49, 4  ;;  %v127_v53 = vrot.slane %v126_v50, 4  ;;  %v113_v54 = vld.sshfl [vmem:[#allocation1 + $0x10] sm:$0xff pattern:$0x75316420] }
  0x3a   :  { %v114_v56 = vld.sshfl [vmem:[#allocation1 + $0x18] sm:$0xff pattern:$0x75316420]  ;;  %v133_v57 = vsel %vm61_vm0, %v113_v54, 0.0  ;;  %vm499_vm5 = vcmp.eq.s32.totalorder %v160_v55, %v164_v0 }
  0x3b   :  { %v121_v59 = vadd.f32 %v120_v52, %v119_v49  ;;  %v128_v60 = vadd.f32 %v127_v53, %v126_v50  ;;  %v134_v61 = vrot.slane %v133_v57, 4  ;;  %v140_v62 = vsel %vm61_vm0, %v114_v56, 0.0  ;;  %171 = vst [vmem:[#allocation1 + $0x10] ss:$2 sm:$0xff] %v453_v1 }
  0x3c   :  { %v141_v63 = vrot.slane %v140_v62, 4 }
  0x3d   :  { %v122_v3 = vrot.slane %v121_v59, 2  ;;  %v129_v4 = vrot.slane %v128_v60, 2  ;;  %v135_v5 = vadd.f32 %v134_v61, %v133_v57 }
  0x3e   :  { %v142_v7 = vadd.f32 %v141_v63, %v140_v62 }
  0x3f   :  { %v123_v9 = vadd.f32 %v122_v3, %v121_v59  ;;  %v130_v10 = vadd.f32 %v129_v4, %v128_v60  ;;  %v136_v11 = vrot.slane %v135_v5, 2  ;;  %v172_v12 = vld.sshfl [vmem:[#allocation1] sm:$0xff pattern:$0x75316420] }
  0x40   :  { %v143_v1 = vrot.slane %v142_v7, 2  ;;  %v173_v15 = vld.sshfl [vmem:[#allocation1 + $0x8] sm:$0xff pattern:$0x75316420]  ;;  %v180_v16 = vsel %vm487_vm2, %v172_v12, 0.0 }
  0x41   :  { %v131_v17 = vrot.slane %v130_v10, 1  ;;  %v137_v18 = vadd.f32 %v136_v11, %v135_v5  ;;  %v124_v19 = vrot.slane %v123_v9, 1  ;;  %v181_v20 = vsel %vm491_vm3, %v173_v15, 0.0 }
  0x42   :  { %v144_v21 = vadd.f32 %v143_v1, %v142_v7  ;;  %v174_v22 = vld.sshfl [vmem:[#allocation1 + $0x10] sm:$0xff pattern:$0x75316420]  ;;  %v175_v23 = vld.sshfl [vmem:[#allocation1 + $0x18] sm:$0xff pattern:$0x75316420] }
  0x43   :  { %v138_v24 = vrot.slane %v137_v18, 1  ;;  %v125_v25 = vadd.f32 %v124_v19, %v123_v9  ;;  %v132_v26 = vadd.f32 %v131_v17, %v130_v10  ;;  %v182_v27 = vsel %vm495_vm4, %v174_v22, 0.0 }
  0x44   :  { %v145_v29 = vrot.slane %v144_v21, 1  ;;  %v183_v30 = vsel %vm499_vm5, %v175_v23, 0.0  ;;  %v184_v32 = vsel %vm61_vm0, %v180_v16, 0.0  ;;  %v191_v34 = vsel %vm61_vm0, %v181_v20, 0.0 }
  0x45   :  { %v139_v36 = vadd.f32 %v138_v24, %v137_v18  ;;  %303 = vlog2.f32 %v125_v25  ;;  %v185_v37 = vrot.slane %v184_v32, 4  ;;  %v192_v38 = vrot.slane %v191_v34, 4 }
  0x46   :  { %v146_v39 = vadd.f32 %v145_v29, %v144_v21  ;;  %305 = vlog2.f32 %v132_v26  ;;  %v198_v40 = vsel %vm61_vm0, %v182_v27, 0.0  ;;  %v205_v41 = vsel %vm61_vm0, %v183_v30, 0.0 }
  0x47   :  { %307 = vlog2.f32 %v139_v36  ;;  %v186_v42 = vadd.f32 %v185_v37, %v184_v32  ;;  %v193_v44 = vadd.f32 %v192_v38, %v191_v34  ;;  %v199_v45 = vrot.slane %v198_v40, 4 }
  0x48   :  { %309 = vlog2.f32 %v146_v39  ;;  %v206_v47 = vrot.slane %v205_v41, 4 }
  0x49   :  { %v187_v48 = vrot.slane %v186_v42, 2  ;;  %v194_v49 = vrot.slane %v193_v44, 2  ;;  %v200_v50 = vadd.f32 %v199_v45, %v198_v40 }
  0x4a   :  { %v207_v51 = vadd.f32 %v206_v47, %v205_v41 }
  0x4b   :  { %v304_v52 = vpop.eup %303  ;;  %v188_v53 = vadd.f32 %v187_v48, %v186_v42  ;;  %v195_v54 = vadd.f32 %v194_v49, %v193_v44  ;;  %v201_v55 = vrot.slane %v200_v50, 2 }
  0x4c   :  { %v306_v56 = vpop.eup %305  ;;  %v148_v57 = vmul.f32 0.6931472, %v304_v52  ;;  %v208_v58 = vrot.slane %v207_v51, 2 }
  0x4d   :  { %v308_v59 = vpop.eup %307  ;;  %v150_v60 = vmul.f32 0.6931472, %v306_v56  ;;  %v189_v61 = vrot.slane %v188_v53, 1  ;;  %v196_v62 = vrot.slane %v195_v54, 1  ;;  %v202_v63 = vadd.f32 %v201_v55, %v200_v50 }
  0x4e   :  { %v310_v2 = vpop.eup %309  ;;  %v152_v0 = vmul.f32 0.6931472, %v308_v59  ;;  %v155_v3 = vadd.f32 %v148_v57, %v462_v31  ;;  %v209_v4 = vadd.f32 %v208_v58, %v207_v51 }
  0x4f   :  { %v154_v5 = vmul.f32 0.6931472, %v310_v2  ;;  %v156_v6 = vadd.f32 %v150_v60, %v460_v28  ;;  %v190_v7 = vadd.f32 %v189_v61, %v188_v53  ;;  %v197_v8 = vadd.f32 %v196_v62, %v195_v54 }
  0x50   :  { %v157_v9 = vadd.f32 %v152_v0, %v469_v35  ;;  %v203_v10 = vrot.slane %v202_v63, 1  ;;  %v210_v11 = vrot.slane %v209_v4, 1 }
  0x51   :  { %v158_v12 = vadd.f32 %v154_v5, %v465_v33  ;;  %v213_v1 = vsub.f32 %v156_v6, %v197_v8  ;;  %v216_v13 = vsub.f32 %v190_v7, %v155_v3  ;;  %v217_v16 = vsub.f32 %v197_v8, %v156_v6 }
  0x52   :  { %v204_v14 = vadd.f32 %v203_v10, %v202_v63  ;;  %v211_v15 = vadd.f32 %v210_v11, %v209_v4  ;;  %v212_v17 = vsub.f32 %v155_v3, %v190_v7 }
  0x53   :  { %v220_v31 = vmul.f32 1.442695, %v216_v13  ;;  %v232_v18 = vrot.slane %v213_v1, 7  ;;  %v222_v22 = vmul.f32 1.442695, %v217_v16 }
  0x54   :  { %v214_v19 = vsub.f32 %v157_v9, %v204_v14  ;;  %v215_v28 = vsub.f32 %v158_v12, %v211_v15  ;;  %v218_v20 = vsub.f32 %v204_v14, %v157_v9  ;;  %v219_v21 = vsub.f32 %v211_v15, %v158_v12 }
  0x55   :  { %311 = vpow2.f32 %v220_v31  ;;  %v236_v35 = vsel %vm235_vm6, %v212_v17, %v232_v18 }
  0x56   :  { %v233_v33 = vrot.slane %v214_v19, 6  ;;  %v234_v23 = vrot.slane %v215_v28, 5  ;;  %v224_v24 = vmul.f32 1.442695, %v218_v20  ;;  %v226_v25 = vmul.f32 1.442695, %v219_v21 }
  0x57   :  { %313 = vpow2.f32 %v222_v22 }
  0x58   :  { %v238_v26 = vsel %vm237_vm7, %v233_v33, %v234_v23  ;;  %315 = vpow2.f32 %v224_v24 }
  0x59   :  { %v240_v29 = vsel %vm239_vm8, %v236_v35, %v238_v26  ;;  %317 = vpow2.f32 %v226_v25 }
  0x5a   :  { %v242_v30 = vsel %vm46_vm1, %v240_v29, 0.0 }
  0x5b   :  { %v312_v32 = vpop.eup %311  ;;  %247 = vst.msk [vmem:[#allocation7] sm:$0xf] %vm525_vm9, %v242_v30 }
  0x5c   :  { %271 = dma.vmem_to_hbm [thread:$0]  %s267_s1, 64, %s269_s24, [#allocation4]  }
  0x5d   :  { %v314_v34 = vpop.eup %313 }
  0x5e   :  { %v316_v36 = vpop.eup %315  ;;  %v252_v46 = vrot.slane %v314_v34, 7 }
  0x5f   :  { %v318_v37 = vpop.eup %317  ;;  %v253_v38 = vrot.slane %v316_v36, 6 }
  0x60   :  { %v254_v39 = vrot.slane %v318_v37, 5  ;;  %v255_v40 = vsel %vm235_vm6, %v312_v32, %v252_v46 }
  0x62   :  { %v256_v41 = vsel %vm237_vm7, %v253_v38, %v254_v39 }
  0x63   :  { %v257_v42 = vsel %vm239_vm8, %v255_v40, %v256_v41 }
  0x64   :  { %v259_v44 = vsel %vm46_vm1, %v257_v42, 2.0 }
  0x65   :  { %260 = vst.msk [vmem:[#allocation8] sm:$0xf] %vm525_vm9, %v259_v44 }
  0x66   :  { %282 = dma.vmem_to_hbm [thread:$0]  %s278_s25, 64, %s280_s28, [#allocation9]  }
  0x67   :  { %419 = dma.done.wait [#allocation4], 64  }
  0x68   :  { %420 = vsyncadd [#allocation4], 4294967232 }
  0x69   :  { %421 = dma.done.wait [#allocation9], 64  }
  0x6a   :  { %422 = vsyncadd [#allocation9], 4294967232 }
  0x6b   :  { %291 = vsyncpa [#allocation3], 1 }
  0x6c   :  { %292 = vsyncpa [#allocation6], 1 }
  0x6d   :  { %293 = vsyncpa [#allocation4], 1 }
  0x6e   :  { %294 = vsyncpa [#allocation9], 1 }

</bundles_post_ra>
